<compile_context>
chip_gen: v5e
topology: v5e:2x2
jax: 0.10.0
libtpu: 0.0.40
codegen_flags: <defaults>
</compile_context>

<pallas_src>
import math

import jax
import jax.numpy as jnp
from jax.experimental import pallas as pl
from jax.experimental.pallas import tpu as pltpu

STOCH = 32        # stochastic_size
DET = 96          # deterministic_size
HIDDEN = 128      # config.hidden_size
TM_ROWS = 1024    # max row tile; ~3-4 MiB VMEM incl. lane padding


def _round_up(x, m):
    return ((x + m - 1) // m) * m


def _elu(x):
    # ELU(alpha=1): x if x > 0 else exp(x) - 1. Runs in x.dtype (bf16 inside
    # the kernel). No clamp: the select discards the positive-branch exp lanes
    # and exp of a finite value cannot be NaN, so padded remainder rows stay
    # harmless (their HBM writeback is masked anyway).
    return jnp.where(x > 0, x, jnp.exp(x) - 1.0)


def continue_mlp_kernel(post_ref, det_ref, w1p_ref, w1d_ref, b1_ref,
                        w2_ref, b2_ref, w3_ref, b3_ref, o_ref):
    """One TM-row tile of the 3-layer MLP head.

    First layer = two partial matmuls (posterior part + deterministic part)
    accumulated into the same f32 tile, which fuses the torch.cat into the
    kernel. Matmul operands are bf16 with f32 MXU accumulation; bias adds are
    f32, ELU is bf16 and feeds the next matmul directly.
    """
    xp = post_ref[...].astype(jnp.bfloat16)   # no-op when inputs are bf16
    xd = det_ref[...].astype(jnp.bfloat16)

    h = jnp.dot(xp, w1p_ref[...], preferred_element_type=jnp.float32)
    h = h + jnp.dot(xd, w1d_ref[...], preferred_element_type=jnp.float32)
    h = _elu((h + b1_ref[...]).astype(jnp.bfloat16))          # (TM, H) bf16

    h = jnp.dot(h, w2_ref[...], preferred_element_type=jnp.float32)
    h = _elu((h + b2_ref[...]).astype(jnp.bfloat16))          # (TM, H) bf16

    logits = jnp.dot(h, w3_ref[...], preferred_element_type=jnp.float32)
    o_ref[...] = logits + b3_ref[...]                         # (TM, 1) f32


def init_params(key):
    """Deterministic synthetic parameters matching the module's shapes."""
    in_dim = STOCH + DET
    k1, k2, k3, k4, k5, k6 = jax.random.split(key, 6)
    w1 = (jax.random.normal(k1, (in_dim, HIDDEN), jnp.float32)
          / math.sqrt(in_dim)).astype(jnp.bfloat16)
    w1p, w1d = w1[:STOCH], w1[STOCH:]                      # split for fused cat
    b1 = 0.1 * jax.random.normal(k4, (1, HIDDEN), jnp.float32)
    w2 = (jax.random.normal(k2, (HIDDEN, HIDDEN), jnp.float32)
          / math.sqrt(HIDDEN)).astype(jnp.bfloat16)
    b2 = 0.1 * jax.random.normal(k5, (1, HIDDEN), jnp.float32)
    w3 = (jax.random.normal(k3, (HIDDEN, 1), jnp.float32)
          / math.sqrt(HIDDEN)).astype(jnp.bfloat16)
    b3 = 0.1 * jax.random.normal(k6, (1, 1), jnp.float32)
    return (w1p, w1d, b1, w2, b2, w3, b3)


def _choose_tm(n, tm_max):
    # Always >=2 grid steps (so v7x's two TensorCores both get a share of the
    # "parallel" row axis); round to the 8-row sublane granule.
    half = _round_up(pl.cdiv(n, 2), 8)
    return max(8, min(tm_max, half))


def continue_model_forward(posterior, deterministic, params, *, tm=TM_ROWS):
    """Returns the Bernoulli logits, shape batch_shape + (1,), f32."""
    w1p, w1d, b1, w2, b2, w3, b3 = params
    batch_shape = posterior.shape[:-1]
    n = int(math.prod(batch_shape))

    post2d = posterior.reshape(n, STOCH)        # reshapes only -- no concat/pad
    det2d = deterministic.reshape(n, DET)

    tm = _choose_tm(n, tm)
    grid = (pl.cdiv(n, tm),)

    in_bytes = post2d.dtype.itemsize            # 2 for bf16 inputs
    weight_bytes = ((w1p.size + w1d.size + w2.size + w3.size) * 2
                    + (b1.size + b2.size + b3.size) * 4)
    cost = pl.CostEstimate(
        flops=2 * n * ((STOCH + DET) * HIDDEN + HIDDEN * HIDDEN + HIDDEN),
        transcendentals=2 * n * HIDDEN,
        bytes_accessed=n * (STOCH + DET) * in_bytes + n * 4 + weight_bytes,
    )

    def row_spec(cols):
        return pl.BlockSpec((tm, cols), lambda i: (i, 0))

    def resident_spec(shape):
        return pl.BlockSpec(shape, lambda i: (0, 0))

    out = pl.pallas_call(
        continue_mlp_kernel,
        out_shape=jax.ShapeDtypeStruct((n, 1), jnp.float32),
        grid=grid,
        in_specs=[
            row_spec(STOCH),                    # posterior rows
            row_spec(DET),                      # deterministic rows
            resident_spec((STOCH, HIDDEN)),     # w1[:STOCH]
            resident_spec((DET, HIDDEN)),       # w1[STOCH:]
            resident_spec((1, HIDDEN)),         # b1
            resident_spec((HIDDEN, HIDDEN)),    # w2
            resident_spec((1, HIDDEN)),         # b2
            resident_spec((HIDDEN, 1)),         # w3
            resident_spec((1, 1)),              # b3
        ],
        out_specs=pl.BlockSpec((tm, 1), lambda i: (i, 0)),
        compiler_params=pltpu.CompilerParams(
            dimension_semantics=("parallel",),
            vmem_limit_bytes=16 * 1024 * 1024,
        ),
        cost_estimate=cost,
    )(post2d, det2d, w1p, w1d, b1, w2, b2, w3, b3)

    # TODO(synk): torch.distributions.Bernoulli(logits=x) has no Pallas
    # equivalent; we return the logits (the distribution is a thin wrapper).
    return out.reshape(*batch_shape, 1)


if __name__ == "__main__":
    key = jax.random.PRNGKey(0)
    k_post, k_det, k_param = jax.random.split(key, 3)

    B, T = 2, 8
    # The upstream RSSM producer emits bf16 activations; consuming them as
    # bf16 halves the kernel's dominant HBM read traffic.
    posterior = jax.random.normal(
        k_post, (B, T, STOCH), jnp.float32).astype(jnp.bfloat16)
    deterministic = jax.random.normal(
        k_det, (B, T, DET), jnp.float32).astype(jnp.bfloat16)
    params = init_params(k_param)

    logits = continue_model_forward(posterior, deterministic, params)
    jax.block_until_ready(logits)

    assert logits.shape == (B, T, 1), logits.shape
    assert logits.dtype == jnp.float32

    # Plain-JAX reference mirroring the kernel's bf16-operand / f32-accumulate
    # / bf16-ELU math (but with a real concatenated layer-1 matmul).
    w1p, w1d, b1, w2, b2, w3, b3 = params
    x = jnp.concatenate([posterior, deterministic], -1).reshape(-1, STOCH + DET)
    w1 = jnp.concatenate([w1p, w1d], 0)
    h = _elu((jnp.dot(x, w1, preferred_element_type=jnp.float32)
              + b1).astype(jnp.bfloat16))
    h = _elu((jnp.dot(h, w2, preferred_element_type=jnp.float32)
              + b2).astype(jnp.bfloat16))
    ref = (jnp.dot(h, w3, preferred_element_type=jnp.float32)
           + b3).reshape(B, T, 1)
    assert jnp.allclose(logits, ref, atol=2e-2, rtol=2e-2), (
        float(jnp.max(jnp.abs(logits - ref))))

    print("KERNEL_OK")
</pallas_src>

<mosaic_0001>
module attributes {stable_mosaic.version = 11 : i64} {
  func.func @continue_mlp_kernel(%arg0: i32, %arg1: memref<8x32xbf16, #tpu.memory_space<vmem>>, %arg2: memref<8x96xbf16, #tpu.memory_space<vmem>>, %arg3: memref<32x128xbf16, #tpu.memory_space<vmem>>, %arg4: memref<96x128xbf16, #tpu.memory_space<vmem>>, %arg5: memref<1x128xf32, #tpu.memory_space<vmem>>, %arg6: memref<128x128xbf16, #tpu.memory_space<vmem>>, %arg7: memref<1x128xf32, #tpu.memory_space<vmem>>, %arg8: memref<128x1xbf16, #tpu.memory_space<vmem>>, %arg9: memref<1x1xf32, #tpu.memory_space<vmem>>, %arg10: memref<8x1xf32, #tpu.memory_space<vmem>>) attributes {dimension_semantics = [#tpu.dimension_semantics<parallel>], iteration_bounds = array<i64: 2>, scalar_prefetch = 0 : i64, scratch_operands = 0 : i64, tpu.core_type = #tpu.core_type<tc>, window_params = [{transform_indices = @transform_0, window_bounds = array<i64: 8, 32>}, {transform_indices = @transform_1, window_bounds = array<i64: 8, 96>}, {pipeline_mode = #tpu.pipeline_mode<synchronous>, transform_indices = @transform_2, window_bounds = array<i64: 32, 128>}, {pipeline_mode = #tpu.pipeline_mode<synchronous>, transform_indices = @transform_3, window_bounds = array<i64: 96, 128>}, {pipeline_mode = #tpu.pipeline_mode<synchronous>, transform_indices = @transform_4, window_bounds = array<i64: 1, 128>}, {pipeline_mode = #tpu.pipeline_mode<synchronous>, transform_indices = @transform_5, window_bounds = array<i64: 128, 128>}, {pipeline_mode = #tpu.pipeline_mode<synchronous>, transform_indices = @transform_6, window_bounds = array<i64: 1, 128>}, {pipeline_mode = #tpu.pipeline_mode<synchronous>, transform_indices = @transform_7, window_bounds = array<i64: 128, 1>}, {pipeline_mode = #tpu.pipeline_mode<synchronous>, transform_indices = @transform_8, window_bounds = array<i64: 1, 1>}, {transform_indices = @transform_9, window_bounds = array<i64: 8, 1>}]} {
    %c0 = arith.constant 0 : index
    %c0_0 = arith.constant 0 : index
    %0 = vector.load %arg1[%c0, %c0_0] : memref<8x32xbf16, #tpu.memory_space<vmem>>, vector<8x32xbf16>
    %c0_1 = arith.constant 0 : index
    %c0_2 = arith.constant 0 : index
    %1 = vector.load %arg2[%c0_1, %c0_2] : memref<8x96xbf16, #tpu.memory_space<vmem>>, vector<8x96xbf16>
    %c0_3 = arith.constant 0 : index
    %c0_4 = arith.constant 0 : index
    %2 = vector.load %arg3[%c0_3, %c0_4] : memref<32x128xbf16, #tpu.memory_space<vmem>>, vector<32x128xbf16>
    %cst = arith.constant dense<0.000000e+00> : vector<8x128xf32>
    %3 = tpu.matmul %0, %2, %cst {dimension_numbers = #tpu.dot_dimension_numbers<[1], [0], [0], [1], [0, 0, 1, 1], [], []>} : vector<8x32xbf16>, vector<32x128xbf16>, vector<8x128xf32> -> vector<8x128xf32>
    %c0_5 = arith.constant 0 : index
    %c0_6 = arith.constant 0 : index
    %4 = vector.load %arg4[%c0_5, %c0_6] : memref<96x128xbf16, #tpu.memory_space<vmem>>, vector<96x128xbf16>
    %cst_7 = arith.constant dense<0.000000e+00> : vector<8x128xf32>
    %5 = tpu.matmul %1, %4, %cst_7 {dimension_numbers = #tpu.dot_dimension_numbers<[1], [0], [0], [1], [0, 0, 1, 1], [], []>} : vector<8x96xbf16>, vector<96x128xbf16>, vector<8x128xf32> -> vector<8x128xf32>
    %6 = arith.addf %3, %5 : vector<8x128xf32>
    %c0_8 = arith.constant 0 : index
    %c0_9 = arith.constant 0 : index
    %7 = vector.load %arg5[%c0_8, %c0_9] : memref<1x128xf32, #tpu.memory_space<vmem>>, vector<1x128xf32>
    %8 = vector.broadcast %7 : vector<1x128xf32> to vector<8x128xf32>
    %9 = arith.addf %6, %8 : vector<8x128xf32>
    %10 = arith.truncf %9 : vector<8x128xf32> to vector<8x128xbf16>
    %cst_10 = arith.constant 0.000000e+00 : bf16
    %11 = vector.broadcast %cst_10 : bf16 to vector<8x128xbf16>
    %12 = arith.cmpf ogt, %10, %11 : vector<8x128xbf16>
    %13 = math.exp %10 : vector<8x128xbf16>
    %cst_11 = arith.constant 1.000000e+00 : bf16
    %14 = vector.broadcast %cst_11 : bf16 to vector<8x128xbf16>
    %15 = arith.subf %13, %14 : vector<8x128xbf16>
    %16 = arith.select %12, %10, %15 : vector<8x128xi1>, vector<8x128xbf16>
    %c0_12 = arith.constant 0 : index
    %c0_13 = arith.constant 0 : index
    %17 = vector.load %arg6[%c0_12, %c0_13] : memref<128x128xbf16, #tpu.memory_space<vmem>>, vector<128x128xbf16>
    %cst_14 = arith.constant dense<0.000000e+00> : vector<8x128xf32>
    %18 = tpu.matmul %16, %17, %cst_14 {dimension_numbers = #tpu.dot_dimension_numbers<[1], [0], [0], [1], [0, 0, 1, 1], [], []>} : vector<8x128xbf16>, vector<128x128xbf16>, vector<8x128xf32> -> vector<8x128xf32>
    %c0_15 = arith.constant 0 : index
    %c0_16 = arith.constant 0 : index
    %19 = vector.load %arg7[%c0_15, %c0_16] : memref<1x128xf32, #tpu.memory_space<vmem>>, vector<1x128xf32>
    %20 = vector.broadcast %19 : vector<1x128xf32> to vector<8x128xf32>
    %21 = arith.addf %18, %20 : vector<8x128xf32>
    %22 = arith.truncf %21 : vector<8x128xf32> to vector<8x128xbf16>
    %cst_17 = arith.constant 0.000000e+00 : bf16
    %23 = vector.broadcast %cst_17 : bf16 to vector<8x128xbf16>
    %24 = arith.cmpf ogt, %22, %23 : vector<8x128xbf16>
    %25 = math.exp %22 : vector<8x128xbf16>
    %cst_18 = arith.constant 1.000000e+00 : bf16
    %26 = vector.broadcast %cst_18 : bf16 to vector<8x128xbf16>
    %27 = arith.subf %25, %26 : vector<8x128xbf16>
    %28 = arith.select %24, %22, %27 : vector<8x128xi1>, vector<8x128xbf16>
    %c0_19 = arith.constant 0 : index
    %c0_20 = arith.constant 0 : index
    %29 = vector.load %arg8[%c0_19, %c0_20] : memref<128x1xbf16, #tpu.memory_space<vmem>>, vector<128x1xbf16>
    %cst_21 = arith.constant dense<0.000000e+00> : vector<8x1xf32>
    %30 = tpu.matmul %28, %29, %cst_21 {dimension_numbers = #tpu.dot_dimension_numbers<[1], [0], [0], [1], [0, 0, 1, 1], [], []>} : vector<8x128xbf16>, vector<128x1xbf16>, vector<8x1xf32> -> vector<8x1xf32>
    %c0_22 = arith.constant 0 : index
    %c0_23 = arith.constant 0 : index
    %31 = vector.load %arg9[%c0_22, %c0_23] : memref<1x1xf32, #tpu.memory_space<vmem>>, vector<1x1xf32>
    %32 = vector.broadcast %31 : vector<1x1xf32> to vector<8x1xf32>
    %33 = arith.addf %30, %32 : vector<8x1xf32>
    %c0_24 = arith.constant 0 : index
    %c0_25 = arith.constant 0 : index
    %34 = vector.load %arg10[%c0_24, %c0_25] : memref<8x1xf32, #tpu.memory_space<vmem>>, vector<8x1xf32>
    tpu.vector_store %arg10[%c0_24, %c0_25], %33 {strides = array<i32>} : memref<8x1xf32, #tpu.memory_space<vmem>>, vector<8x1xf32>,
    return
  }
  func.func @transform_0(%arg0: i32) -> (i32, i32) {
    %c0_i32 = arith.constant 0 : i32
    %c0_i32_0 = arith.constant 0 : i32
    return %arg0, %c0_i32 : i32, i32
  }
  func.func @transform_1(%arg0: i32) -> (i32, i32) {
    %c0_i32 = arith.constant 0 : i32
    %c0_i32_0 = arith.constant 0 : i32
    return %arg0, %c0_i32 : i32, i32
  }
  func.func @transform_2(%arg0: i32) -> (i32, i32) {
    %c0_i32 = arith.constant 0 : i32
    %c0_i32_0 = arith.constant 0 : i32
    %c0_i32_1 = arith.constant 0 : i32
    return %c0_i32, %c0_i32_0 : i32, i32
  }
  func.func @transform_3(%arg0: i32) -> (i32, i32) {
    %c0_i32 = arith.constant 0 : i32
    %c0_i32_0 = arith.constant 0 : i32
    %c0_i32_1 = arith.constant 0 : i32
    return %c0_i32, %c0_i32_0 : i32, i32
  }
  func.func @transform_4(%arg0: i32) -> (i32, i32) {
    %c0_i32 = arith.constant 0 : i32
    %c0_i32_0 = arith.constant 0 : i32
    %c0_i32_1 = arith.constant 0 : i32
    return %c0_i32, %c0_i32_0 : i32, i32
  }
  func.func @transform_5(%arg0: i32) -> (i32, i32) {
    %c0_i32 = arith.constant 0 : i32
    %c0_i32_0 = arith.constant 0 : i32
    %c0_i32_1 = arith.constant 0 : i32
    return %c0_i32, %c0_i32_0 : i32, i32
  }
  func.func @transform_6(%arg0: i32) -> (i32, i32) {
    %c0_i32 = arith.constant 0 : i32
    %c0_i32_0 = arith.constant 0 : i32
    %c0_i32_1 = arith.constant 0 : i32
    return %c0_i32, %c0_i32_0 : i32, i32
  }
  func.func @transform_7(%arg0: i32) -> (i32, i32) {
    %c0_i32 = arith.constant 0 : i32
    %c0_i32_0 = arith.constant 0 : i32
    %c0_i32_1 = arith.constant 0 : i32
    return %c0_i32, %c0_i32_0 : i32, i32
  }
  func.func @transform_8(%arg0: i32) -> (i32, i32) {
    %c0_i32 = arith.constant 0 : i32
    %c0_i32_0 = arith.constant 0 : i32
    %c0_i32_1 = arith.constant 0 : i32
    return %c0_i32, %c0_i32_0 : i32, i32
  }
  func.func @transform_9(%arg0: i32) -> (i32, i32) {
    %c0_i32 = arith.constant 0 : i32
    %c0_i32_0 = arith.constant 0 : i32
    return %arg0, %c0_i32 : i32, i32
  }
}

</mosaic_0001>

<bundles_post_ra>
// kernel: tpu_custom_call.1
= control target key start
LH: loop header
LB: loop body
LE: loop exit
PB: predicated region body
PF: predicated region fallthrough
CT: control target
= control target key end

     0   :  { %s1459_s0 = inlined_call_operand.hbm [shape: bf16[16,32], index: 0, kind: input, shape index: {}]   ;;  %s1460_s1 = inlined_call_operand.hbm [shape: bf16[16,96], index: 1, kind: input, shape index: {}]   ;;  %s1461_s2 = inlined_call_operand.hbm [shape: bf16[32,128], index: 2, kind: input, shape index: {}]   ;;  %s1462_s3 = inlined_call_operand.hbm [shape: bf16[96,128], index: 3, kind: input, shape index: {}]   ;;  %s1463_s4 = inlined_call_operand.vmem [shape: f32[1,128], index: 4, kind: input, shape index: {}]   ;;  %s1464_s5 = inlined_call_operand.vmem [shape: bf16[128,128], index: 5, kind: input, shape index: {}]   ;;  %s1465_s6 = inlined_call_operand.vmem [shape: f32[1,128], index: 6, kind: input, shape index: {}]   ;;  %s1466_s7 = inlined_call_operand.vmem [shape: bf16[128,1], index: 7, kind: input, shape index: {}]   ;;  %s1467_s8 = inlined_call_operand.<no memory space> [shape: f32[1,1], index: 8, kind: input, shape index: {}]   ;;  %s1468_s9 = inlined_call_operand.vmem [shape: f32[16,1], index: 9, kind: output, shape index: {}]  }
   0x1   :  { %1469 = sst [smem:[#allocation15_spill]] %s1461_s2  ;;  %v14_v0 = vstv %s1467_s8 }
   0x2   :  { %1470 = sst [smem:[#allocation16_spill]] %s1462_s3  ;;  %15 = vst [vmem:[#allocation2] sm:$0x1] %v14_v0 }
   0x3   :  { %16 = vsyncpa [#allocation4], 0 }
   0x4   :  { %18 = vsyncpa [#allocation4 + $0x1], 0 }
   0x5   :  { %19 = vsyncpa [#allocation6], 0 }
   0x6   :  { %21 = vsyncpa [#allocation6 + $0x1], 0 }
   0x7   :  { %22 = vsyncpa [#allocation9], 0  ;;  %s1263_s11 = smov 0   ;;  %s1265_s12 = smov 0  }
   0x8   :  { %s1267_s13 = smov 0   ;;  %s1269_s14 = smov 0  }
   0x9 LB: > { %s1471_s2 = sld [smem:[#allocation15_spill]]  ;;  %s1287_s17 = sadd.s32 4294967295, %s1204_s14   ;;  %s1204_s14 = sphi %s1269_s14, %s1481_s14   ;;  %s1200_s13 = sphi %s1267_s13, %s1480_s13   ;;  %s1196_s12 = sphi %s1265_s12, %s1479_s12   ;;  %s1192_s11 = sphi %s1263_s11, %s1478_s11  }
   0xa   : > { %p824_p0 = scmp.ge.s32.totalorder %s1204_s14, 1  ;;  %p49_p1 = scmp.eq.s32.totalorder %s1287_s17, 0 }
   0xb   : > { %p258_p2 = scmp.lt.s32.totalorder %s1204_s14, 3  ;;  %s1206_s19 = smov [#allocation7]  }
   0xc   : > { %s271_s20 = sshll.u32 %s1206_s19, 4  ;;  %s1473_s3 = sld [smem:[#allocation16_spill]]  ;;  %s272_s20 = int_to_ptr.vmem [resolvable:$true] %s271_s20 }
   0xd   : > { %p1292_p3 = pnand %p824_p0, %p258_p2  ;;  %s1207_s24 = smov [#allocation8]  }
   0xe   : > { %s285_s25 = sshll.u32 %s1207_s24, 4  ;;  %s1208_s26 = smov 64   ;;  %s286_s25 = int_to_ptr.vmem [resolvable:$true] %s285_s25 }
   0xf   : > { %s269_s16 = sshll.u32 %s1471_s2, 4  ;;  %p976_p4 = pneg %p1292_p3  ;;  %s270_s16 = int_to_ptr.hbm [resolvable:$true] %s269_s16 }
  0x10   : > { %s1209_s27 = smov 4   ;;  %s1304_s28 = sadd.s32 1, %s1204_s14  }
  0x11   : > { %p977_p5 = pnand %p976_p4, %p49_p1  ;;  %s35_s29 = sadd.s32 1, %s1200_s13 }
  0x12   : > { %s283_s23 = sshll.u32 %s1473_s3, 4  ;;  %s32_s30 = ssub.s32 %s1204_s14, %s1304_s28  ;;  %s284_s23 = int_to_ptr.hbm [resolvable:$true] %s283_s23 }
  0x13   : > { %979 = dma.hbm_to_vmem [thread:$0]  (!%p977_p5), %s270_s16, 256, %s272_s20, [#allocation6], %s1208_s26, %s1208_s26, %s1209_s27  }
  0x14   : > { %982 = dma.hbm_to_vmem [thread:$0]  (!%p977_p5), %s284_s23, 768, %s286_s25, [#allocation9], %s1208_s26, %s1208_s26, %s1209_s27  }
  0x15   : > { %p42_p6 = scmp.ne.s32.totalorder %s1200_s13, %s1196_s12  ;;  %p33_p7 = scmp.eq.s32.totalorder %s32_s30, 0 }
  0x16   : > { %p43_p8 = scmp.eq.s32.totalorder %s1204_s14, 0  ;;  %p48_p9 = scmp.ne.s32.totalorder %s1196_s12, %s1192_s11 }
  0x17   : > { %p992_p10 = scmp.lt.s32.totalorder %s1204_s14, 2  ;;  %s314_s15 = sand.u32 1, %s1200_s13  }
  0x18   : > { %s1316_s10 = scalar_select %p33_p7, %s1200_s13, %s35_s29  }
  0x19   : > { %p44_p11 = por %p43_p8, %p42_p6  ;;  %p1320_p12 = por %p49_p1, %p48_p9 }
  0x1a   : > { %1474 = sst [smem:[#allocation14_spill]] %s1316_s10  ;;  %s829_s16 = sshll.u32 %s1204_s14, 2 }
  0x1b   : > { %s828_s19 = sshll.u32 %s314_s15, 2  ;;  %s322_s22 = scalar_lea.hbm %s1459_s0, %s829_s16 }
  0x1c   : > { %s324_s23 = sshll.u32 %s322_s22, 4  ;;  %s318_s24 = scalar_lea.vmem [#allocation3], %s828_s19  ;;  %s325_s23 = int_to_ptr.hbm [resolvable:$true] %s324_s23 }
  0x1d   : > { %s326_s11 = sshll.u32 %s318_s24, 4  ;;  %p1331_p13 = pnand %p992_p10, %p44_p11  ;;  %s327_s11 = int_to_ptr.vmem [resolvable:$true] %s326_s11 }
  0x1e   : > { %s341_s29 = scalar_lea.hbm %s1460_s1, %s829_s16  ;;  %s333_s30 = sand.u32 1, %s1204_s14  }
  0x1f   : > { %s315_s2 = scalar_lea.sflag [#allocation4], %s314_s15  ;;  %s1098_s20 = sshra.s32 %s325_s23, 4  ;;  %s1099_s20 = int_to_ptr.hbm [resolvable:$true] %s1098_s20 }
  0x20   : > { %s1100_s21 = scalar_lea.hbm %s1099_s20, 4  ;;  %p1102_p2 = pneg %p1331_p13 }
  0x21   : > { %p1101_p0 = scmp.ne.s32.totalorder %s1099_s20, %s1100_s21  ;;  %s1105_s3 = scalar_lea.hbm %s1459_s0, 8 }
  0x22   : > { %p1106_p6 = scmp.lt.s32.totalorder %s1099_s20, %s1459_s0  ;;  %p1107_p7 = scmp.lt.s32.totalorder %s1105_s3, %s1100_s21 }
  0x23   : > { %p1103_p4 = pnand %p1102_p2, %p1101_p0 }
  0x24   : > { %p1108_p8 = por %p1107_p7, %p1106_p6 }
  0x25   : > { %p1104_p5 = pneg %p1103_p4 }
  0x27   : > { %p1109_p9 = pnand %p1108_p8, %p1104_p5 }
  0x29   : > { %1112 = shalt.err (!%p1109_p9)
}
  0x2a   : > { %986 = dma.hbm_to_vmem [thread:$0]  (!%p1331_p13), %s325_s23, 64, %s327_s11, %s315_s2  }
  0x2b   : > { %s343_s14 = sshll.u32 %s341_s29, 4  ;;  %s337_s15 = scalar_lea.vmem [#allocation5], %s828_s19  ;;  %s344_s14 = int_to_ptr.hbm [resolvable:$true] %s343_s14 }
  0x2c   : > { %s345_s16 = sshll.u32 %s337_s15, 4  ;;  %s334_s10 = scalar_lea.sflag [#allocation6], %s333_s30  ;;  %s346_s16 = int_to_ptr.vmem [resolvable:$true] %s345_s16 }
  0x2d   : > { %s1128_s22 = sshra.s32 %s344_s14, 4  ;;  %s1135_s21 = scalar_lea.hbm %s1460_s1, 8  ;;  %s1129_s22 = int_to_ptr.hbm [resolvable:$true] %s1128_s22 }
  0x2e   : > { %s1130_s24 = scalar_lea.hbm %s1129_s22, 4  ;;  %p1136_p4 = scmp.lt.s32.totalorder %s1129_s22, %s1460_s1 }
  0x2f   : > { %p1131_p10 = scmp.ne.s32.totalorder %s1129_s22, %s1130_s24  ;;  %p1137_p5 = scmp.lt.s32.totalorder %s1135_s21, %s1130_s24 }
  0x31   : > { %p1133_p11 = pnand %p1131_p10, %p1102_p2  ;;  %p1138_p6 = por %p1137_p5, %p1136_p4 }
  0x33   : > { %p1134_p0 = pneg %p1133_p11 }
  0x35   : > { %p1139_p7 = pnand %p1138_p6, %p1134_p0 }
  0x37   : > { %1142 = shalt.err (!%p1139_p7)
}
  0x38   : > { %989 = dma.hbm_to_vmem [thread:$0]  (!%p1331_p13), %s344_s14, 64, %s346_s16, %s334_s10  }
  0x39   : > { %354 = sbr.rel (%p1292_p3) target bundleno = 542 (0x21e), region = 56  ;;  %s356_s19 = sand.u32 (!%p1292_p3), 1, %s1196_s12  }
  0x3a   : > { %s1366_s23 = sshll.u32 (!%p1292_p3), %s356_s19, 2  ;;  %s357_s11 = scalar_lea.sflag (!%p1292_p3), [#allocation4], %s356_s19 }
  0x3b   : > { %s360_s29 = scalar_lea.vmem (!%p1292_p3), [#allocation3], %s1366_s23 }
  0x3e   : > { %1175 = dma.done.wait (%p1320_p12), %s357_s11, 64  }
  0x3f   : > { %1177 = vsyncadd (%p1320_p12), %s357_s11, 4294967232  ;;  %s366_s10 = sand.u32 1, %s1287_s17   ;;  %s370_s18 = scalar_lea.vmem [#allocation5], %s1366_s23 }
  0x40   : > { %s367_s25 = scalar_lea.sflag [#allocation6], %s366_s10 }
  0x41   : > { %1179 = dma.done.wait (%p1320_p12), %s367_s25, 64  }
  0x42   : > { %1181 = vsyncadd (%p1320_p12), %s367_s25, 4294967232 }
  0x43   : > { %1183 = dma.done.wait (%p49_p1), [#allocation6], 256  }
  0x44   : > { %1185 = vsyncadd (%p49_p1), [#allocation6], 4294967040 }
  0x45   : > { %1187 = dma.done.wait (%p49_p1), [#allocation9], 768  }
  0x46   : > { %1189 = vsyncadd (%p49_p1), [#allocation9], 4294966528  ;;  %v947_v1 = vld [vmem:[#allocation8 + $0x28] sm:$0xff]  ;;  %v941_v2 = vld [vmem:[#allocation7 + $0x8] sm:$0xff]  ;;  %vm508_vm0 = vcmask 261120   ;;  %vm479_vm1 = vcmask 785408  }
  0x47   : > { %485 = vmatpush.bf16.msra.mxu0 %v947_v1  ;;  %v946_v3 = vld [vmem:[#allocation8 + $0x20] sm:$0xff]  ;;  %518 = vmatpush.bf16.msra.mxu1 %v941_v2  ;;  %v940_v4 = vld [vmem:[#allocation7] sm:$0xff]  ;;  %v945_v5 = vld [vmem:[#allocation8 + $0x18] sm:$0xff]  ;;  %p420_p1 = scmp.lt.s32.totalorder %s1287_s17, 1  ;;  %vm714_vm6 = vcmask 7168  }
  0x48   : > { %v425_v6 = vld [vmem:[%s360_s29] sm:$0xf]  ;;  %v944_v7 = vld [vmem:[#allocation8 + $0x10] sm:$0xff]  ;;  %v943_v8 = vld [vmem:[#allocation8 + $0x8] sm:$0xff] }
  0x49   : > { %v942_v9 = vld [vmem:[#allocation8] sm:$0xff]  ;;  %v426_v10 = vld [vmem:[%s370_s18] sm:$0xf]  ;;  %v955_v11 = vld [vmem:[%s1464_s5 + $0x38] sm:$0xff]  ;;  %s1483_s17 = smov (!%p420_p1, %s1287_s17), 1 }
  0x4a   : > { %609 = vmatpush.bf16.msra.mxu2 %v955_v11  ;;  %v954_v12 = vld [vmem:[%s1464_s5 + $0x30] sm:$0xff]  ;;  %v953_v13 = vld [vmem:[%s1464_s5 + $0x28] sm:$0xff]  ;;  %v952_v14 = vld [vmem:[%s1464_s5 + $0x20] sm:$0xff]  ;;  %s837_s29 = sshll.u32 %s1483_s17, 3 }
  0x4b   : > { %486 = vmatpush.bf16.msra.mxu0 %v946_v3  ;;  %519 = vmatpush.bf16.msra.mxu1 %v940_v4  ;;  %v951_v15 = vld [vmem:[%s1464_s5 + $0x18] sm:$0xff]  ;;  %v950_v16 = vld [vmem:[%s1464_s5 + $0x10] sm:$0xff]  ;;  %v949_v17 = vld [vmem:[%s1464_s5 + $0x8] sm:$0xff]  ;;  %s423_s18 = scalar_lea.vmem %s1468_s9, %s837_s29 }
  0x4c   : > { %v948_v19 = vld [vmem:[%s1464_s5] sm:$0xff]  ;;  %v963_v21 = vld [vmem:[%s1466_s7 + $0x38] sm:$0xff]  ;;  %v962_v22 = vld [vmem:[%s1466_s7 + $0x30] sm:$0xff] }
  0x4d   : > { %701 = vmatpush.bf16.msra.mxu3 %v963_v21  ;;  %v1031_v23 = vld [vmem:[%s1463_s4] ss:$0 sm:$0xff]  ;;  %v961_v37 = vld [vmem:[%s1466_s7 + $0x28] sm:$0xff]  ;;  %v959_v39 = vld [vmem:[%s1466_s7 + $0x18] sm:$0xff] }
  0x4e   : > { %871 = vmatmul.msk.bf16.vlgmr.msra.gmra.mxu1 %vm508_vm0, %v425_v6  ;;  %610 = vmatpush.bf16.msra.mxu2 %v954_v12  ;;  %v960_v38 = vld [vmem:[%s1466_s7 + $0x20] sm:$0xff]  ;;  %v958_v40 = vld [vmem:[%s1466_s7 + $0x10] sm:$0xff]  ;;  %v957_v41 = vld [vmem:[%s1466_s7 + $0x8] sm:$0xff] }
  0x4f   : > { %487 = vmatpush.bf16.msra.mxu0 %v945_v5  ;;  %v956_v42 = vld [vmem:[%s1466_s7] sm:$0xff] }
  0x50   : > { %v1032_v43 = vld [vmem:[%s1465_s6] ss:$0 sm:$0xff] }
  0x51   : > { %702 = vmatpush.bf16.msra.mxu3 %v962_v22  ;;  %v1033_v56 = vld [vmem:[#allocation2] ss:$0 sm:$0xff] }
  0x52   : > { %611 = vmatpush.bf16.msra.mxu2 %v953_v13 }
  0x53   : > { %488 = vmatpush.bf16.msra.mxu0 %v944_v7 }
  0x55   : > { %703 = vmatpush.bf16.msra.mxu3 %v961_v37 }
  0x56   : > { %612 = vmatpush.bf16.msra.mxu2 %v952_v14 }
  0x57   : > { %489 = vmatpush.bf16.msra.mxu0 %v943_v8 }
  0x59   : > { %704 = vmatpush.bf16.msra.mxu3 %v960_v38 }
  0x5a   : > { %613 = vmatpush.bf16.msra.mxu2 %v951_v15 }
  0x5b   : > { %490 = vmatpush.bf16.msra.mxu0 %v942_v9 }
  0x5d   : > { %705 = vmatpush.bf16.msra.mxu3 %v959_v39 }
  0x5e   : > { %862 = vmatmul.msk.bf16.vlgmr.msra.gmra.mxu0 %vm479_vm1, %v426_v10  ;;  %614 = vmatpush.bf16.msra.mxu2 %v950_v16 }
  0x61   : > { %706 = vmatpush.bf16.msra.mxu3 %v958_v40 }
  0x62   : > { %615 = vmatpush.bf16.msra.mxu2 %v949_v17 }
  0x65   : > { %707 = vmatpush.bf16.msra.mxu3 %v957_v41 }
  0x66   : > { %616 = vmatpush.bf16.msra.mxu2 %v948_v19 }
  0x69   : > { %708 = vmatpush.bf16.msra.mxu3 %v956_v42 }
  0xcb   : > { %v521_v18 = vpop.f32.mrf.mxu1 }
  0xd3   : > { %v523_v20 = vpop.f32.mrf.mxu1 }
  0xdb   : > { %v492_v24 = vpop.f32.mrf.mxu0 }
  0xdc   : > { %v522_v25 = vadd.f32 %v521_v18, %v492_v24 }
  0xde   : > { %v529_v26 = vadd.f32 %v1031_v23, %v522_v25 }
  0xe0   : > { %v530_v27 = vpack.c.bf16 %v529_v26, %v529_v26 }
  0xe2   : > { %v531_v28 = vunpack.c.l.bf16 %v530_v27 }
  0xe3   : > { %v494_v29 = vpop.f32.mrf.mxu0 }
  0xe4   : > { %v533_v30 = vmul.f32 1.442695, %v531_v28  ;;  %vm532_vm2 = vcmp.gt.f32.partialorder %v531_v28, 0.0 }
  0xe5   : > { %vm539_vm3 = vmpackc.low %vm532_vm2, %vm532_vm2 }
  0xe6   : > { %1034 = vpow2.f32 %v533_v30 }
  0xec   : > { %v1035_v31 = vpop.eup %1034 }
  0xed   : > { %v535_v32 = vpack.c.bf16 %v1035_v31, %v1035_v31 }
  0xef   : > { %v536_v33 = vunpack.c.l.bf16 %v535_v32 }
  0xf1   : > { %v872_v34 = vadd.f32 -1.0, %v536_v33 }
  0xf3   : > { %v538_v35 = vpack.c.bf16 %v872_v34, %v872_v34 }
  0xf5   : > { %v540_v36 = vsel %vm539_vm3, %v530_v27, %v538_v35 }
  0xf6   : > { %617 = vmatmul.bf16.vlgmr.msra.gmra.mxu2 %v540_v36 }
 0x179   : > { %v618_v44 = vpop.f32.mrf.mxu2 }
 0x17a   : > { %v619_v45 = vadd.f32 %v1032_v43, %v618_v44 }
 0x17c   : > { %v622_v46 = vpack.c.bf16 %v619_v45, %v619_v45 }
 0x17e   : > { %v623_v47 = vunpack.c.l.bf16 %v622_v46 }
 0x180   : > { %v625_v48 = vmul.f32 1.442695, %v623_v47  ;;  %vm624_vm4 = vcmp.gt.f32.partialorder %v623_v47, 0.0 }
 0x181   : > { %v620_v49 = vpop.f32.mrf.mxu2  ;;  %vm631_vm5 = vmpackc.low %vm624_vm4, %vm624_vm4 }
 0x182   : > { %1036 = vpow2.f32 %v625_v48 }
 0x188   : > { %v1037_v50 = vpop.eup %1036 }
 0x189   : > { %v627_v51 = vpack.c.bf16 %v1037_v50, %v1037_v50 }
 0x18b   : > { %v628_v52 = vunpack.c.l.bf16 %v627_v51 }
 0x18d   : > { %v905_v53 = vadd.f32 -1.0, %v628_v52 }
 0x18f   : > { %v630_v54 = vpack.c.bf16 %v905_v53, %v905_v53 }
 0x191   : > { %v632_v55 = vsel %vm631_vm5, %v622_v46, %v630_v54 }
 0x192   : > { %709 = vmatmul.bf16.vlgmr.msra.gmra.mxu3 %v632_v55 }
 0x215   : > { %v710_v57 = vpop.f32.mrf.mxu3 }
 0x216   : > { %v711_v58 = vadd.f32 %v1033_v56, %v710_v57 }
 0x218   : > { %715 = vst.msk [vmem:[%s423_s18] sm:$0xff] %vm714_vm6, %v711_v58 }
 0x21d   : > { %v712_v59 = vpop.f32.mrf.mxu3 }
 0x21e PF: > { %s1477_s8 = sld [smem:[#allocation14_spill]]  ;;  %p25_p3 = scmp.ge.s32.totalorder %s1304_s28, 4  }
 0x21f   : > { %s1478_s11 = smov %s1196_s12  ;;  %s1479_s12 = smov %s1200_s13 }
 0x220   : > { %s1481_s14 = smov %s1304_s28  ;;  %27 = sbr.rel (!%p25_p3) target bundleno = 9 (0x9), region = 117 }
 0x224   : > { %s1480_s13 = smov %s1477_s8 }
 0x225   :  { %735 = vsyncpa [#allocation4], 1 }
 0x226   :  { %737 = vsyncpa [#allocation4 + $0x1], 1 }
 0x227   :  { %738 = vsyncpa [#allocation6], 1 }
 0x228   :  { %740 = vsyncpa [#allocation6 + $0x1], 1 }
 0x229   :  { %741 = vsyncpa [#allocation9], 1 }

</bundles_post_ra>
